<compile_context>
chip_gen: v5e
topology: v5e:2x2
jax: 0.10.0
libtpu: 0.0.40
codegen_flags: <defaults>
</compile_context>

<pallas_src>
import functools

import jax
import jax.numpy as jnp
from jax import lax
from jax.experimental import pallas as pl
from jax.experimental.pallas import tpu as pltpu


def _span_attention_kernel(start_ref, end_ref, w0_ref, b0_ref, g_ref, beta_ref,
                           w1_ref, b1_ref, o_ref, *, eps, tq):
    # start_ref: (1, TQ, H) native dtype     end_ref: (1, S, H) native dtype
    # w0_ref: (H, H) native                  w1_ref: (Cp, H) native
    # b0_ref / g_ref / beta_ref: (1, H) f32  b1_ref: (1, Cp) f32
    # o_ref: (1, TQ, Cp)
    qi = pl.program_id(1)
    row0 = pl.multiple_of(qi * tq, tq)

    start = start_ref[0]                            # (TQ, H) native dtype
    end_all = end_ref[0]                            # (S, H)  batch-resident
    end_tile = end_ref[0, pl.ds(row0, tq), :]       # (TQ, H) residual rows (aligned vld)
    end_tile_f32 = end_tile.astype(jnp.float32)

    h_dim = start.shape[-1]
    inv_sqrt_h = 1.0 / (float(h_dim) ** 0.5)

    # Pre-scale the (TQ, H) query tile instead of the much larger (TQ, S) scores.
    start_scaled = start * inv_sqrt_h

    # attention scores over all keys: (TQ, S); native-dtype MXU, f32 accumulate.
    scores = lax.dot_general(start_scaled, end_all, (((1,), (1,)), ((), ())),
                             preferred_element_type=jnp.float32)

    # softmax in f32; reciprocal on the (otherwise idle) EUP slot.
    m = jnp.max(scores, axis=-1, keepdims=True)
    p = jnp.exp(scores - m)
    denom = jnp.sum(p, axis=-1, keepdims=True)
    weights = (p * pl.reciprocal(denom, approx=True)).astype(end_all.dtype)

    # x = weights @ end + end   (PV matmul at native MXU rate, f32 accumulate)
    x = jnp.dot(weights, end_all, preferred_element_type=jnp.float32) + end_tile_f32

    # dense_0 (x @ W0^T + b0) -> ReLU   (weight consumed in nn.Linear layout)
    h = lax.dot_general(x.astype(w0_ref.dtype), w0_ref[...], (((1,), (1,)), ((), ())),
                        preferred_element_type=jnp.float32)
    h = jnp.maximum(h + b0_ref[...], 0.0)

    # LayerNorm over H (f32 math; params already f32 from the wrapper)
    mean = jnp.mean(h, axis=-1, keepdims=True)
    cent = h - mean
    var = jnp.mean(cent * cent, axis=-1, keepdims=True)
    hn = cent * lax.rsqrt(var + eps)
    hn = hn * g_ref[...] + beta_ref[...]

    # residual + dense_1 (class dim padded to Cp lanes -> lane-dense vst)
    y = (hn + end_tile_f32).astype(w1_ref.dtype)
    out = lax.dot_general(y, w1_ref[...], (((1,), (1,)), ((), ())),
                          preferred_element_type=jnp.float32)
    out = out + b1_ref[...]

    o_ref[0] = out.astype(o_ref.dtype)


def _vmem_budget_bytes():
    try:
        cap = int(pltpu.get_tpu_info().vmem_capacity_bytes)
    except Exception:
        cap = 64 * 1024 * 1024          # conservative fallback (v7x per-TensorCore)
    return int(cap * 0.85)              # ~108 MiB on v5e/v6e, ~54 MiB on v7x


def _vmem_need_bytes(tq, S, H, Cp, itemsize):
    # end slab (single-buffered) + double-buffered start/out streams + resident
    # params + in-kernel f32 temporaries (scores/p/weights, x/h/hn/y, padded out).
    return (S * H * itemsize
            + 2 * tq * H * itemsize
            + 2 * tq * Cp * itemsize
            + (H * H + Cp * H) * itemsize
            + (3 * H + Cp) * 4
            + 3 * tq * S * 4
            + 6 * tq * H * 4
            + 2 * tq * Cp * 4)


def _pick_tq(S, H, Cp, itemsize, budget):
    # bf16 blocks need tq % 16 == 0 to stay on the native (16,128) packed tile.
    min_mult = 8 if itemsize >= 4 else (16 if itemsize == 2 else 32)
    legal = [c for c in (1024, 512, 256, 128, 64, 32, 16, 8)
             if c % min_mult == 0 and S % c == 0]
    for cand in legal:                                   # largest first
        if _vmem_need_bytes(cand, S, H, Cp, itemsize) <= budget:
            return cand
    if legal:
        return legal[-1]                                 # smallest legal tile
    return S                                             # full-seq block (always layout-legal)


def span_attention(start_position, end_position, w0, b0, ln_gamma, ln_beta, w1, b1,
                   *, eps=1e-5, tq=None):
    """start_position/end_position: (B, S, H); w0: (H, H); w1: (C, H) (nn.Linear layout)."""
    B, S, H = start_position.shape
    assert end_position.shape == (B, S, H)
    C = w1.shape[0]
    dtype = start_position.dtype
    itemsize = jnp.dtype(dtype).itemsize

    # lane-dense padded class dim (multiple of 128)
    Cp = max(128, ((C + 127) // 128) * 128)

    budget = _vmem_budget_bytes()
    if tq is None:
        tq = _pick_tq(S, H, Cp, itemsize, budget)
    assert S % tq == 0, "seq length must be divisible by the query tile"
    qt = S // tq

    # Weights stay in native dtype (full MXU rate); biases / LN params are cast
    # to f32 once here so the kernel never re-casts per grid step.
    w1p = jnp.pad(w1, ((0, Cp - C), (0, 0)))
    b1p = jnp.pad(b1.astype(jnp.float32), ((0, Cp - C),)).reshape(1, Cp)
    b0_2d = b0.astype(jnp.float32).reshape(1, H)
    g_2d = ln_gamma.astype(jnp.float32).reshape(1, H)
    beta_2d = ln_beta.astype(jnp.float32).reshape(1, H)

    kernel = functools.partial(_span_attention_kernel, eps=float(eps), tq=tq)

    flops = 2 * B * S * (S * H          # scores
                         + S * H        # weights @ end
                         + H * H        # dense_0
                         + H * Cp)      # dense_1 (padded)
    bytes_accessed = (itemsize * (2 * B * S * H + H * H + Cp * H + B * S * Cp)
                      + 4 * (3 * H + Cp))
    cost = pl.CostEstimate(flops=int(flops),
                           transcendentals=int(B * S * S + 2 * B * S),
                           bytes_accessed=int(bytes_accessed))

    vmem_need = _vmem_need_bytes(tq, S, H, Cp, itemsize)
    vmem_limit = int(min(max(int(1.3 * vmem_need), 32 * 1024 * 1024), budget))

    out_shape = jax.ShapeDtypeStruct((B, S, Cp), dtype)
    out_spec = pl.BlockSpec((1, tq, Cp), lambda b, q: (b, q, 0))

    def build_in_specs(single_buffer_resident):
        pm = {"pipeline_mode": pl.Buffered(1)} if single_buffer_resident else {}
        return [
            # streamed query tile (default double-buffering -> DMA/compute overlap)
            pl.BlockSpec((1, tq, H), lambda b, q: (b, q, 0)),
            # batch-resident end slab: block index only changes at batch boundaries
            pl.BlockSpec((1, S, H), lambda b, q: (b, 0, 0), **pm),
            # constant-index params: one VMEM buffer each
            pl.BlockSpec((H, H), lambda b, q: (0, 0), **pm),     # dense_0 weight
            pl.BlockSpec((1, H), lambda b, q: (0, 0), **pm),     # dense_0 bias (f32)
            pl.BlockSpec((1, H), lambda b, q: (0, 0), **pm),     # LN gamma (f32)
            pl.BlockSpec((1, H), lambda b, q: (0, 0), **pm),     # LN beta (f32)
            pl.BlockSpec((Cp, H), lambda b, q: (0, 0), **pm),    # dense_1 weight (padded)
            pl.BlockSpec((1, Cp), lambda b, q: (0, 0), **pm),    # dense_1 bias (padded, f32)
        ]

    def run(single_buffer_resident):
        grid_spec = pltpu.PrefetchScalarGridSpec(
            num_scalar_prefetch=0,
            grid=(B, qt),
            in_specs=build_in_specs(single_buffer_resident),
            out_specs=out_spec,
        )
        return pl.pallas_call(
            kernel,
            out_shape=out_shape,
            grid_spec=grid_spec,
            compiler_params=pltpu.CompilerParams(
                dimension_semantics=("parallel", "parallel"),
                vmem_limit_bytes=vmem_limit),
            cost_estimate=cost,
        )(start_position, end_position, w0, b0_2d, g_2d, beta_2d, w1p, b1p)

    try:
        out_padded = run(True)    # single-buffer resident slab/params (v7x VMEM relief)
    except Exception:             # pipeline_mode not supported -> default buffering
        out_padded = run(False)

    # TODO(synk): if a profile shows the padded writeback / post-call slice matters
    # (tiny H + tiny C), return the padded (B, S, Cp) tensor to the consumer instead.
    return out_padded[..., :C]


if __name__ == "__main__":
    batch, seq, hidden_size, num_classes = 2, 8, 32, 4

    key = jax.random.PRNGKey(0)
    ks = jax.random.split(key, 8)

    start_position = jax.random.normal(ks[0], (batch, seq, hidden_size), jnp.float32)
    end_position = jax.random.normal(ks[1], (batch, seq, hidden_size), jnp.float32)

    # Deterministic synthetic module params (nn.Linear / nn.LayerNorm layouts)
    w0 = jax.random.normal(ks[2], (hidden_size, hidden_size), jnp.float32) * 0.02
    b0 = jax.random.normal(ks[3], (hidden_size,), jnp.float32) * 0.02
    ln_gamma = 1.0 + 0.1 * jax.random.normal(ks[4], (hidden_size,), jnp.float32)
    ln_beta = 0.1 * jax.random.normal(ks[5], (hidden_size,), jnp.float32)
    w1 = jax.random.normal(ks[6], (num_classes, hidden_size), jnp.float32) * 0.02
    b1 = jax.random.normal(ks[7], (num_classes,), jnp.float32) * 0.02

    out = span_attention(start_position, end_position, w0, b0, ln_gamma, ln_beta, w1, b1)
    out = jax.block_until_ready(out)

    # Pure-JAX reference (PyTorch semantics, LayerNorm eps=1e-5)
    def ref_fn(sp, ep):
        hp = jax.lax.Precision.HIGHEST
        h = ep.shape[-1]
        scores = jnp.einsum("bqh,bkh->bqk", sp, ep, precision=hp) / jnp.sqrt(jnp.float32(h))
        weights = jax.nn.softmax(scores, axis=-1)
        x = jnp.einsum("bqk,bkh->bqh", weights, ep, precision=hp) + ep
        x = jnp.maximum(jnp.einsum("bqh,oh->bqo", x, w0, precision=hp) + b0, 0.0)
        mean = x.mean(-1, keepdims=True)
        var = ((x - mean) ** 2).mean(-1, keepdims=True)
        x = (x - mean) / jnp.sqrt(var + 1e-5) * ln_gamma + ln_beta
        x = x + ep
        return jnp.einsum("bqh,ch->bqc", x, w1, precision=hp) + b1

    ref = ref_fn(start_position, end_position)
    assert out.shape == (batch, seq, num_classes)
    assert jnp.allclose(out, ref, atol=2e-3, rtol=2e-3), float(jnp.max(jnp.abs(out - ref)))

    print("KERNEL_OK")
</pallas_src>

<mosaic_0001>
module attributes {stable_mosaic.version = 11 : i64} {
  func.func @_span_attention_kernel(%arg0: i32, %arg1: i32, %arg2: memref<1x8x32xf32, #tpu.memory_space<vmem>>, %arg3: memref<1x8x32xf32, #tpu.memory_space<vmem>>, %arg4: memref<32x32xf32, #tpu.memory_space<vmem>>, %arg5: memref<1x32xf32, #tpu.memory_space<vmem>>, %arg6: memref<1x32xf32, #tpu.memory_space<vmem>>, %arg7: memref<1x32xf32, #tpu.memory_space<vmem>>, %arg8: memref<128x32xf32, #tpu.memory_space<vmem>>, %arg9: memref<1x128xf32, #tpu.memory_space<vmem>>, %arg10: memref<1x8x128xf32, #tpu.memory_space<vmem>>) attributes {dimension_semantics = [#tpu.dimension_semantics<parallel>, #tpu.dimension_semantics<parallel>], iteration_bounds = array<i64: 2, 1>, scalar_prefetch = 0 : i64, scratch_operands = 0 : i64, tpu.core_type = #tpu.core_type<tc>, window_params = [{transform_indices = @transform_0, window_bounds = array<i64: 1, 8, 32>}, {pipeline_mode = #tpu.pipeline_mode<synchronous>, transform_indices = @transform_1, window_bounds = array<i64: 1, 8, 32>}, {pipeline_mode = #tpu.pipeline_mode<synchronous>, transform_indices = @transform_2, window_bounds = array<i64: 32, 32>}, {pipeline_mode = #tpu.pipeline_mode<synchronous>, transform_indices = @transform_3, window_bounds = array<i64: 1, 32>}, {pipeline_mode = #tpu.pipeline_mode<synchronous>, transform_indices = @transform_4, window_bounds = array<i64: 1, 32>}, {pipeline_mode = #tpu.pipeline_mode<synchronous>, transform_indices = @transform_5, window_bounds = array<i64: 1, 32>}, {pipeline_mode = #tpu.pipeline_mode<synchronous>, transform_indices = @transform_6, window_bounds = array<i64: 128, 32>}, {pipeline_mode = #tpu.pipeline_mode<synchronous>, transform_indices = @transform_7, window_bounds = array<i64: 1, 128>}, {transform_indices = @transform_8, window_bounds = array<i64: 1, 8, 128>}]} {
    %c8_i32 = arith.constant 8 : i32
    %0 = arith.muli %arg1, %c8_i32 : i32
    %1 = tpu.assume_multiple %0, 8 : i32
    %c0 = arith.constant 0 : index
    %c0_0 = arith.constant 0 : index
    %c0_1 = arith.constant 0 : index
    %2 = vector.load %arg2[%c0, %c0_0, %c0_1] : memref<1x8x32xf32, #tpu.memory_space<vmem>>, vector<1x8x32xf32>
    %3 = vector.shape_cast %2 : vector<1x8x32xf32> to vector<8x32xf32>
    %c0_2 = arith.constant 0 : index
    %c0_3 = arith.constant 0 : index
    %c0_4 = arith.constant 0 : index
    %4 = vector.load %arg3[%c0_2, %c0_3, %c0_4] : memref<1x8x32xf32, #tpu.memory_space<vmem>>, vector<1x8x32xf32>
    %5 = vector.shape_cast %4 : vector<1x8x32xf32> to vector<8x32xf32>
    %c0_5 = arith.constant 0 : index
    %6 = arith.index_cast %1 : i32 to index
    %c0_6 = arith.constant 0 : index
    %7 = vector.load %arg3[%c0_5, %6, %c0_6] : memref<1x8x32xf32, #tpu.memory_space<vmem>>, vector<1x8x32xf32>
    %8 = vector.shape_cast %7 : vector<1x8x32xf32> to vector<8x32xf32>
    %cst = arith.constant 0.176776692 : f32
    %9 = vector.broadcast %cst : f32 to vector<8x32xf32>
    %10 = arith.mulf %3, %9 : vector<8x32xf32>
    %cst_7 = arith.constant dense<0.000000e+00> : vector<8x8xf32>
    %11 = tpu.matmul %10, %5, %cst_7 {dimension_numbers = #tpu.dot_dimension_numbers<[1], [1], [0], [0], [0, 0, 1, 0], [], []>} : vector<8x32xf32>, vector<8x32xf32>, vector<8x8xf32> -> vector<8x8xf32>
    %cst_8 = arith.constant dense<0xFF800000> : vector<8xf32>
    %12 = vector.multi_reduction <maximumf>, %11, %cst_8 [1] : vector<8x8xf32> to vector<8xf32>
    %13 = vector.shape_cast %12 : vector<8xf32> to vector<8x1xf32>
    %14 = vector.broadcast %13 : vector<8x1xf32> to vector<8x8xf32>
    %15 = arith.subf %11, %14 : vector<8x8xf32>
    %16 = math.exp %15 : vector<8x8xf32>
    %cst_9 = arith.constant dense<0.000000e+00> : vector<8xf32>
    %17 = vector.multi_reduction <add>, %16, %cst_9 [1] : vector<8x8xf32> to vector<8xf32>
    %18 = vector.shape_cast %17 : vector<8xf32> to vector<8x1xf32>
    %19 = tpu.reciprocal %18 {approx = true} : vector<8x1xf32> -> vector<8x1xf32>
    %20 = vector.broadcast %19 : vector<8x1xf32> to vector<8x8xf32>
    %21 = arith.mulf %16, %20 : vector<8x8xf32>
    %cst_10 = arith.constant dense<0.000000e+00> : vector<8x32xf32>
    %22 = tpu.matmul %21, %5, %cst_10 {dimension_numbers = #tpu.dot_dimension_numbers<[1], [0], [0], [1], [0, 0, 1, 1], [], []>} : vector<8x8xf32>, vector<8x32xf32>, vector<8x32xf32> -> vector<8x32xf32>
    %23 = arith.addf %22, %8 : vector<8x32xf32>
    %c0_11 = arith.constant 0 : index
    %c0_12 = arith.constant 0 : index
    %24 = vector.load %arg4[%c0_11, %c0_12] : memref<32x32xf32, #tpu.memory_space<vmem>>, vector<32x32xf32>
    %cst_13 = arith.constant dense<0.000000e+00> : vector<8x32xf32>
    %25 = tpu.matmul %23, %24, %cst_13 {dimension_numbers = #tpu.dot_dimension_numbers<[1], [1], [0], [0], [0, 0, 1, 0], [], []>} : vector<8x32xf32>, vector<32x32xf32>, vector<8x32xf32> -> vector<8x32xf32>
    %c0_14 = arith.constant 0 : index
    %c0_15 = arith.constant 0 : index
    %26 = vector.load %arg5[%c0_14, %c0_15] : memref<1x32xf32, #tpu.memory_space<vmem>>, vector<1x32xf32>
    %27 = vector.broadcast %26 : vector<1x32xf32> to vector<8x32xf32>
    %28 = arith.addf %25, %27 : vector<8x32xf32>
    %cst_16 = arith.constant 0.000000e+00 : f32
    %29 = vector.broadcast %cst_16 : f32 to vector<8x32xf32>
    %30 = arith.maximumf %28, %29 : vector<8x32xf32>
    %cst_17 = arith.constant dense<0.000000e+00> : vector<8xf32>
    %31 = vector.multi_reduction <add>, %30, %cst_17 [1] : vector<8x32xf32> to vector<8xf32>
    %32 = vector.shape_cast %31 : vector<8xf32> to vector<8x1xf32>
    %cst_18 = arith.constant 3.200000e+01 : f32
    %33 = vector.broadcast %cst_18 : f32 to vector<8x1xf32>
    %34 = arith.divf %32, %33 : vector<8x1xf32>
    %35 = vector.broadcast %34 : vector<8x1xf32> to vector<8x32xf32>
    %36 = arith.subf %30, %35 : vector<8x32xf32>
    %37 = arith.mulf %36, %36 : vector<8x32xf32>
    %cst_19 = arith.constant dense<0.000000e+00> : vector<8xf32>
    %38 = vector.multi_reduction <add>, %37, %cst_19 [1] : vector<8x32xf32> to vector<8xf32>
    %39 = vector.shape_cast %38 : vector<8xf32> to vector<8x1xf32>
    %cst_20 = arith.constant 3.200000e+01 : f32
    %40 = vector.broadcast %cst_20 : f32 to vector<8x1xf32>
    %41 = arith.divf %39, %40 : vector<8x1xf32>
    %cst_21 = arith.constant 9.99999974E-6 : f32
    %42 = vector.broadcast %cst_21 : f32 to vector<8x1xf32>
    %43 = arith.addf %41, %42 : vector<8x1xf32>
    %44 = math.rsqrt %43 : vector<8x1xf32>
    %45 = vector.broadcast %44 : vector<8x1xf32> to vector<8x32xf32>
    %46 = arith.mulf %36, %45 : vector<8x32xf32>
    %c0_22 = arith.constant 0 : index
    %c0_23 = arith.constant 0 : index
    %47 = vector.load %arg6[%c0_22, %c0_23] : memref<1x32xf32, #tpu.memory_space<vmem>>, vector<1x32xf32>
    %48 = vector.broadcast %47 : vector<1x32xf32> to vector<8x32xf32>
    %49 = arith.mulf %46, %48 : vector<8x32xf32>
    %c0_24 = arith.constant 0 : index
    %c0_25 = arith.constant 0 : index
    %50 = vector.load %arg7[%c0_24, %c0_25] : memref<1x32xf32, #tpu.memory_space<vmem>>, vector<1x32xf32>
    %51 = vector.broadcast %50 : vector<1x32xf32> to vector<8x32xf32>
    %52 = arith.addf %49, %51 : vector<8x32xf32>
    %53 = arith.addf %52, %8 : vector<8x32xf32>
    %c0_26 = arith.constant 0 : index
    %c0_27 = arith.constant 0 : index
    %54 = vector.load %arg8[%c0_26, %c0_27] : memref<128x32xf32, #tpu.memory_space<vmem>>, vector<128x32xf32>
    %cst_28 = arith.constant dense<0.000000e+00> : vector<8x128xf32>
    %55 = tpu.matmul %53, %54, %cst_28 {dimension_numbers = #tpu.dot_dimension_numbers<[1], [1], [0], [0], [0, 0, 1, 0], [], []>} : vector<8x32xf32>, vector<128x32xf32>, vector<8x128xf32> -> vector<8x128xf32>
    %c0_29 = arith.constant 0 : index
    %c0_30 = arith.constant 0 : index
    %56 = vector.load %arg9[%c0_29, %c0_30] : memref<1x128xf32, #tpu.memory_space<vmem>>, vector<1x128xf32>
    %57 = vector.broadcast %56 : vector<1x128xf32> to vector<8x128xf32>
    %58 = arith.addf %55, %57 : vector<8x128xf32>
    %c0_31 = arith.constant 0 : index
    %c0_32 = arith.constant 0 : index
    %c0_33 = arith.constant 0 : index
    %59 = vector.load %arg10[%c0_31, %c0_32, %c0_33] : memref<1x8x128xf32, #tpu.memory_space<vmem>>, vector<1x8x128xf32>
    %60 = vector.shape_cast %59 : vector<1x8x128xf32> to vector<8x128xf32>
    %61 = vector.shape_cast %58 : vector<8x128xf32> to vector<1x8x128xf32>
    tpu.vector_store %arg10[%c0_31, %c0_32, %c0_33], %61 {strides = array<i32>} : memref<1x8x128xf32, #tpu.memory_space<vmem>>, vector<1x8x128xf32>,
    return
  }
  func.func @transform_0(%arg0: i32, %arg1: i32) -> (i32, i32, i32) {
    %c0_i32 = arith.constant 0 : i32
    %c0_i32_0 = arith.constant 0 : i32
    return %arg0, %arg1, %c0_i32 : i32, i32, i32
  }
  func.func @transform_1(%arg0: i32, %arg1: i32) -> (i32, i32, i32) {
    %c0_i32 = arith.constant 0 : i32
    %c0_i32_0 = arith.constant 0 : i32
    %c0_i32_1 = arith.constant 0 : i32
    return %arg0, %c0_i32, %c0_i32_0 : i32, i32, i32
  }
  func.func @transform_2(%arg0: i32, %arg1: i32) -> (i32, i32) {
    %c0_i32 = arith.constant 0 : i32
    %c0_i32_0 = arith.constant 0 : i32
    %c0_i32_1 = arith.constant 0 : i32
    return %c0_i32, %c0_i32_0 : i32, i32
  }
  func.func @transform_3(%arg0: i32, %arg1: i32) -> (i32, i32) {
    %c0_i32 = arith.constant 0 : i32
    %c0_i32_0 = arith.constant 0 : i32
    %c0_i32_1 = arith.constant 0 : i32
    return %c0_i32, %c0_i32_0 : i32, i32
  }
  func.func @transform_4(%arg0: i32, %arg1: i32) -> (i32, i32) {
    %c0_i32 = arith.constant 0 : i32
    %c0_i32_0 = arith.constant 0 : i32
    %c0_i32_1 = arith.constant 0 : i32
    return %c0_i32, %c0_i32_0 : i32, i32
  }
  func.func @transform_5(%arg0: i32, %arg1: i32) -> (i32, i32) {
    %c0_i32 = arith.constant 0 : i32
    %c0_i32_0 = arith.constant 0 : i32
    %c0_i32_1 = arith.constant 0 : i32
    return %c0_i32, %c0_i32_0 : i32, i32
  }
  func.func @transform_6(%arg0: i32, %arg1: i32) -> (i32, i32) {
    %c0_i32 = arith.constant 0 : i32
    %c0_i32_0 = arith.constant 0 : i32
    %c0_i32_1 = arith.constant 0 : i32
    return %c0_i32, %c0_i32_0 : i32, i32
  }
  func.func @transform_7(%arg0: i32, %arg1: i32) -> (i32, i32) {
    %c0_i32 = arith.constant 0 : i32
    %c0_i32_0 = arith.constant 0 : i32
    %c0_i32_1 = arith.constant 0 : i32
    return %c0_i32, %c0_i32_0 : i32, i32
  }
  func.func @transform_8(%arg0: i32, %arg1: i32) -> (i32, i32, i32) {
    %c0_i32 = arith.constant 0 : i32
    %c0_i32_0 = arith.constant 0 : i32
    return %arg0, %arg1, %c0_i32 : i32, i32, i32
  }
}

module attributes {stable_mosaic.version = 11 : i64} {
  func.func @_span_attention_kernel(%arg0: i32, %arg1: i32, %arg2: memref<1x8x32xf32, #tpu.memory_space<vmem>>, %arg3: memref<1x8x32xf32, #tpu.memory_space<vmem>>, %arg4: memref<32x32xf32, #tpu.memory_space<vmem>>, %arg5: memref<1x32xf32, #tpu.memory_space<vmem>>, %arg6: memref<1x32xf32, #tpu.memory_space<vmem>>, %arg7: memref<1x32xf32, #tpu.memory_space<vmem>>, %arg8: memref<128x32xf32, #tpu.memory_space<vmem>>, %arg9: memref<1x128xf32, #tpu.memory_space<vmem>>, %arg10: memref<1x8x128xf32, #tpu.memory_space<vmem>>) attributes {dimension_semantics = [#tpu.dimension_semantics<parallel>, #tpu.dimension_semantics<parallel>], iteration_bounds = array<i64: 2, 1>, scalar_prefetch = 0 : i64, scratch_operands = 0 : i64, tpu.core_type = #tpu.core_type<tc>, window_params = [{transform_indices = @transform_0, window_bounds = array<i64: 1, 8, 32>}, {transform_indices = @transform_1, window_bounds = array<i64: 1, 8, 32>}, {pipeline_mode = #tpu.pipeline_mode<synchronous>, transform_indices = @transform_2, window_bounds = array<i64: 32, 32>}, {pipeline_mode = #tpu.pipeline_mode<synchronous>, transform_indices = @transform_3, window_bounds = array<i64: 1, 32>}, {pipeline_mode = #tpu.pipeline_mode<synchronous>, transform_indices = @transform_4, window_bounds = array<i64: 1, 32>}, {pipeline_mode = #tpu.pipeline_mode<synchronous>, transform_indices = @transform_5, window_bounds = array<i64: 1, 32>}, {pipeline_mode = #tpu.pipeline_mode<synchronous>, transform_indices = @transform_6, window_bounds = array<i64: 128, 32>}, {pipeline_mode = #tpu.pipeline_mode<synchronous>, transform_indices = @transform_7, window_bounds = array<i64: 1, 128>}, {transform_indices = @transform_8, window_bounds = array<i64: 1, 8, 128>}]} {
    %c8_i32 = arith.constant 8 : i32
    %0 = arith.muli %arg1, %c8_i32 : i32
    %1 = tpu.assume_multiple %0, 8 : i32
    %c0 = arith.constant 0 : index
    %c0_0 = arith.constant 0 : index
    %c0_1 = arith.constant 0 : index
    %2 = vector.load %arg2[%c0, %c0_0, %c0_1] : memref<1x8x32xf32, #tpu.memory_space<vmem>>, vector<1x8x32xf32>
    %3 = vector.shape_cast %2 : vector<1x8x32xf32> to vector<8x32xf32>
    %c0_2 = arith.constant 0 : index
    %c0_3 = arith.constant 0 : index
    %c0_4 = arith.constant 0 : index
    %4 = vector.load %arg3[%c0_2, %c0_3, %c0_4] : memref<1x8x32xf32, #tpu.memory_space<vmem>>, vector<1x8x32xf32>
    %5 = vector.shape_cast %4 : vector<1x8x32xf32> to vector<8x32xf32>
    %c0_5 = arith.constant 0 : index
    %6 = arith.index_cast %1 : i32 to index
    %c0_6 = arith.constant 0 : index
    %7 = vector.load %arg3[%c0_5, %6, %c0_6] : memref<1x8x32xf32, #tpu.memory_space<vmem>>, vector<1x8x32xf32>
    %8 = vector.shape_cast %7 : vector<1x8x32xf32> to vector<8x32xf32>
    %cst = arith.constant 0.176776692 : f32
    %9 = vector.broadcast %cst : f32 to vector<8x32xf32>
    %10 = arith.mulf %3, %9 : vector<8x32xf32>
    %cst_7 = arith.constant dense<0.000000e+00> : vector<8x8xf32>
    %11 = tpu.matmul %10, %5, %cst_7 {dimension_numbers = #tpu.dot_dimension_numbers<[1], [1], [0], [0], [0, 0, 1, 0], [], []>} : vector<8x32xf32>, vector<8x32xf32>, vector<8x8xf32> -> vector<8x8xf32>
    %cst_8 = arith.constant dense<0xFF800000> : vector<8xf32>
    %12 = vector.multi_reduction <maximumf>, %11, %cst_8 [1] : vector<8x8xf32> to vector<8xf32>
    %13 = vector.shape_cast %12 : vector<8xf32> to vector<8x1xf32>
    %14 = vector.broadcast %13 : vector<8x1xf32> to vector<8x8xf32>
    %15 = arith.subf %11, %14 : vector<8x8xf32>
    %16 = math.exp %15 : vector<8x8xf32>
    %cst_9 = arith.constant dense<0.000000e+00> : vector<8xf32>
    %17 = vector.multi_reduction <add>, %16, %cst_9 [1] : vector<8x8xf32> to vector<8xf32>
    %18 = vector.shape_cast %17 : vector<8xf32> to vector<8x1xf32>
    %19 = tpu.reciprocal %18 {approx = true} : vector<8x1xf32> -> vector<8x1xf32>
    %20 = vector.broadcast %19 : vector<8x1xf32> to vector<8x8xf32>
    %21 = arith.mulf %16, %20 : vector<8x8xf32>
    %cst_10 = arith.constant dense<0.000000e+00> : vector<8x32xf32>
    %22 = tpu.matmul %21, %5, %cst_10 {dimension_numbers = #tpu.dot_dimension_numbers<[1], [0], [0], [1], [0, 0, 1, 1], [], []>} : vector<8x8xf32>, vector<8x32xf32>, vector<8x32xf32> -> vector<8x32xf32>
    %23 = arith.addf %22, %8 : vector<8x32xf32>
    %c0_11 = arith.constant 0 : index
    %c0_12 = arith.constant 0 : index
    %24 = vector.load %arg4[%c0_11, %c0_12] : memref<32x32xf32, #tpu.memory_space<vmem>>, vector<32x32xf32>
    %cst_13 = arith.constant dense<0.000000e+00> : vector<8x32xf32>
    %25 = tpu.matmul %23, %24, %cst_13 {dimension_numbers = #tpu.dot_dimension_numbers<[1], [1], [0], [0], [0, 0, 1, 0], [], []>} : vector<8x32xf32>, vector<32x32xf32>, vector<8x32xf32> -> vector<8x32xf32>
    %c0_14 = arith.constant 0 : index
    %c0_15 = arith.constant 0 : index
    %26 = vector.load %arg5[%c0_14, %c0_15] : memref<1x32xf32, #tpu.memory_space<vmem>>, vector<1x32xf32>
    %27 = vector.broadcast %26 : vector<1x32xf32> to vector<8x32xf32>
    %28 = arith.addf %25, %27 : vector<8x32xf32>
    %cst_16 = arith.constant 0.000000e+00 : f32
    %29 = vector.broadcast %cst_16 : f32 to vector<8x32xf32>
    %30 = arith.maximumf %28, %29 : vector<8x32xf32>
    %cst_17 = arith.constant dense<0.000000e+00> : vector<8xf32>
    %31 = vector.multi_reduction <add>, %30, %cst_17 [1] : vector<8x32xf32> to vector<8xf32>
    %32 = vector.shape_cast %31 : vector<8xf32> to vector<8x1xf32>
    %cst_18 = arith.constant 3.200000e+01 : f32
    %33 = vector.broadcast %cst_18 : f32 to vector<8x1xf32>
    %34 = arith.divf %32, %33 : vector<8x1xf32>
    %35 = vector.broadcast %34 : vector<8x1xf32> to vector<8x32xf32>
    %36 = arith.subf %30, %35 : vector<8x32xf32>
    %37 = arith.mulf %36, %36 : vector<8x32xf32>
    %cst_19 = arith.constant dense<0.000000e+00> : vector<8xf32>
    %38 = vector.multi_reduction <add>, %37, %cst_19 [1] : vector<8x32xf32> to vector<8xf32>
    %39 = vector.shape_cast %38 : vector<8xf32> to vector<8x1xf32>
    %cst_20 = arith.constant 3.200000e+01 : f32
    %40 = vector.broadcast %cst_20 : f32 to vector<8x1xf32>
    %41 = arith.divf %39, %40 : vector<8x1xf32>
    %cst_21 = arith.constant 9.99999974E-6 : f32
    %42 = vector.broadcast %cst_21 : f32 to vector<8x1xf32>
    %43 = arith.addf %41, %42 : vector<8x1xf32>
    %44 = math.rsqrt %43 : vector<8x1xf32>
    %45 = vector.broadcast %44 : vector<8x1xf32> to vector<8x32xf32>
    %46 = arith.mulf %36, %45 : vector<8x32xf32>
    %c0_22 = arith.constant 0 : index
    %c0_23 = arith.constant 0 : index
    %47 = vector.load %arg6[%c0_22, %c0_23] : memref<1x32xf32, #tpu.memory_space<vmem>>, vector<1x32xf32>
    %48 = vector.broadcast %47 : vector<1x32xf32> to vector<8x32xf32>
    %49 = arith.mulf %46, %48 : vector<8x32xf32>
    %c0_24 = arith.constant 0 : index
    %c0_25 = arith.constant 0 : index
    %50 = vector.load %arg7[%c0_24, %c0_25] : memref<1x32xf32, #tpu.memory_space<vmem>>, vector<1x32xf32>
    %51 = vector.broadcast %50 : vector<1x32xf32> to vector<8x32xf32>
    %52 = arith.addf %49, %51 : vector<8x32xf32>
    %53 = arith.addf %52, %8 : vector<8x32xf32>
    %c0_26 = arith.constant 0 : index
    %c0_27 = arith.constant 0 : index
    %54 = vector.load %arg8[%c0_26, %c0_27] : memref<128x32xf32, #tpu.memory_space<vmem>>, vector<128x32xf32>
    %cst_28 = arith.constant dense<0.000000e+00> : vector<8x128xf32>
    %55 = tpu.matmul %53, %54, %cst_28 {dimension_numbers = #tpu.dot_dimension_numbers<[1], [1], [0], [0], [0, 0, 1, 0], [], []>} : vector<8x32xf32>, vector<128x32xf32>, vector<8x128xf32> -> vector<8x128xf32>
    %c0_29 = arith.constant 0 : index
    %c0_30 = arith.constant 0 : index
    %56 = vector.load %arg9[%c0_29, %c0_30] : memref<1x128xf32, #tpu.memory_space<vmem>>, vector<1x128xf32>
    %57 = vector.broadcast %56 : vector<1x128xf32> to vector<8x128xf32>
    %58 = arith.addf %55, %57 : vector<8x128xf32>
    %c0_31 = arith.constant 0 : index
    %c0_32 = arith.constant 0 : index
    %c0_33 = arith.constant 0 : index
    %59 = vector.load %arg10[%c0_31, %c0_32, %c0_33] : memref<1x8x128xf32, #tpu.memory_space<vmem>>, vector<1x8x128xf32>
    %60 = vector.shape_cast %59 : vector<1x8x128xf32> to vector<8x128xf32>
    %61 = vector.shape_cast %58 : vector<8x128xf32> to vector<1x8x128xf32>
    tpu.vector_store %arg10[%c0_31, %c0_32, %c0_33], %61 {strides = array<i32>} : memref<1x8x128xf32, #tpu.memory_space<vmem>>, vector<1x8x128xf32>,
    return
  }
  func.func @transform_0(%arg0: i32, %arg1: i32) -> (i32, i32, i32) {
    %c0_i32 = arith.constant 0 : i32
    %c0_i32_0 = arith.constant 0 : i32
    return %arg0, %arg1, %c0_i32 : i32, i32, i32
  }
  func.func @transform_1(%arg0: i32, %arg1: i32) -> (i32, i32, i32) {
    %c0_i32 = arith.constant 0 : i32
    %c0_i32_0 = arith.constant 0 : i32
    %c0_i32_1 = arith.constant 0 : i32
    return %arg0, %c0_i32, %c0_i32_0 : i32, i32, i32
  }
  func.func @transform_2(%arg0: i32, %arg1: i32) -> (i32, i32) {
    %c0_i32 = arith.constant 0 : i32
    %c0_i32_0 = arith.constant 0 : i32
    %c0_i32_1 = arith.constant 0 : i32
    return %c0_i32, %c0_i32_0 : i32, i32
  }
  func.func @transform_3(%arg0: i32, %arg1: i32) -> (i32, i32) {
    %c0_i32 = arith.constant 0 : i32
    %c0_i32_0 = arith.constant 0 : i32
    %c0_i32_1 = arith.constant 0 : i32
    return %c0_i32, %c0_i32_0 : i32, i32
  }
  func.func @transform_4(%arg0: i32, %arg1: i32) -> (i32, i32) {
    %c0_i32 = arith.constant 0 : i32
    %c0_i32_0 = arith.constant 0 : i32
    %c0_i32_1 = arith.constant 0 : i32
    return %c0_i32, %c0_i32_0 : i32, i32
  }
  func.func @transform_5(%arg0: i32, %arg1: i32) -> (i32, i32) {
    %c0_i32 = arith.constant 0 : i32
    %c0_i32_0 = arith.constant 0 : i32
    %c0_i32_1 = arith.constant 0 : i32
    return %c0_i32, %c0_i32_0 : i32, i32
  }
  func.func @transform_6(%arg0: i32, %arg1: i32) -> (i32, i32) {
    %c0_i32 = arith.constant 0 : i32
    %c0_i32_0 = arith.constant 0 : i32
    %c0_i32_1 = arith.constant 0 : i32
    return %c0_i32, %c0_i32_0 : i32, i32
  }
  func.func @transform_7(%arg0: i32, %arg1: i32) -> (i32, i32) {
    %c0_i32 = arith.constant 0 : i32
    %c0_i32_0 = arith.constant 0 : i32
    %c0_i32_1 = arith.constant 0 : i32
    return %c0_i32, %c0_i32_0 : i32, i32
  }
  func.func @transform_8(%arg0: i32, %arg1: i32) -> (i32, i32, i32) {
    %c0_i32 = arith.constant 0 : i32
    %c0_i32_0 = arith.constant 0 : i32
    return %arg0, %arg1, %c0_i32 : i32, i32, i32
  }
}

</mosaic_0001>

<bundles_post_ra>
// kernel: tpu_custom_call.1
= control target key start
LH: loop header
LB: loop body
LE: loop exit
PB: predicated region body
PF: predicated region fallthrough
CT: control target
= control target key end

     0   :  { %s1130_s0 = inlined_call_operand.vmem [shape: f32[2,8,32], index: 0, kind: input, shape index: {}]   ;;  %s1131_s1 = inlined_call_operand.vmem [shape: f32[2,8,32], index: 1, kind: input, shape index: {}]   ;;  %s1132_s2 = inlined_call_operand.vmem [shape: f32[32,32], index: 2, kind: input, shape index: {}]   ;;  %s1133_s3 = inlined_call_operand.vmem [shape: f32[1,32], index: 3, kind: input, shape index: {}]   ;;  %s1134_s4 = inlined_call_operand.vmem [shape: f32[1,32], index: 4, kind: input, shape index: {}]   ;;  %s1135_s5 = inlined_call_operand.vmem [shape: f32[1,32], index: 5, kind: input, shape index: {}]   ;;  %s1136_s6 = inlined_call_operand.vmem [shape: f32[128,32], index: 6, kind: input, shape index: {}]   ;;  %s1137_s7 = inlined_call_operand.vmem [shape: f32[1,128], index: 7, kind: input, shape index: {}]   ;;  %s1138_s8 = inlined_call_operand.hbm [shape: f32[2,8,128], index: 8, kind: output, shape index: {}]  }
   0x1   :  { %1139 = sst [smem:[#allocation5_spill]] %s1130_s0 }
   0x2   :  { %13 = vsyncpa [#allocation3], 0 }
   0x3   :  { %15 = vsyncpa [#allocation3 + $0x1], 0  ;;  %s923_s27 = smov 0   ;;  %s925_s28 = smov 0  }
   0x4   :  { %s927_s29 = smov 0   ;;  %s929_s30 = smov 0  }
   0x5   :  { %s931_s9 = smov 0   ;;  %s933_s10 = smov 0  }
   0x6 LB: > { %s692_s11 = sadd.s32 4294967295, %s875_s10   ;;  %s693_s12 = sadd.s32 4294967294, %s875_s10   ;;  %s875_s10 = sphi %s933_s10, %s21_s10   ;;  %s871_s9 = sphi %s931_s9, %s1147_s9   ;;  %s867_s30 = sphi %s929_s30, %s1146_s30   ;;  %s863_s29 = sphi %s927_s29, %s1145_s29   ;;  %s859_s28 = sphi %s925_s28, %s1144_s28   ;;  %s855_s27 = sphi %s923_s27, %s1143_s27  }
   0x7   : > { %s33_s13 = sadd.s32 1, %s871_s9  ;;  %s222_s14 = sadd.s32 1, %s863_s29 }
   0x8   : > { %p35_p0 = scmp.ge.s32.totalorder %s33_s13, 2  ;;  %p232_p1 = scmp.ne.s32.totalorder %s863_s29, %s859_s28 }
   0x9   : > { %p233_p2 = scmp.eq.s32.totalorder %s692_s11, 1  ;;  %p238_p3 = scmp.ne.s32.totalorder %s859_s28, %s855_s27 }
   0xa   : > { %s1149_s13 = smov (%p35_p0, %s33_s13), 0  ;;  %p239_p5 = scmp.eq.s32.totalorder %s693_s12, 1 }
   0xb   : > { %p963_p4 = por %p233_p2, %p232_p1  ;;  %s217_s16 = ssub.s32 %s871_s9, %s1149_s13 }
   0xc   : > { %p696_p6 = scmp.ge.s32.totalorder %s875_s10, 1  ;;  %p220_p7 = scmp.eq.s32.totalorder %s217_s16, 0 }
   0xd   : > { %p970_p8 = por %p239_p5, %p238_p3  ;;  %p292_p9 = scmp.lt.s32.totalorder %s875_s10, 3 }
   0xe   : > { %s976_s18 = scalar_select %p220_p7, %s863_s29, %s222_s14  }
   0xf   : > { %p293_p10 = pnand %p696_p6, %p292_p9 }
  0x10   : > { %p332_p11 = scmp.lt.s32.totalorder (!%p293_p10), %s867_s30, 1  ;;  %s1142_s0 = sld [smem:[#allocation5_spill]] (!%p293_p10) }
  0x11   : > { %296 = sbr.rel (%p293_p10) target bundleno = 1082 (0x43a), region = 52  ;;  %s329_s25 = sand.u32 (!%p293_p10), 1, %s859_s28  }
  0x12   : > { %s726_s11 = sshll.u32 (!%p293_p10), %s867_s30, 3  ;;  %s588_s24 = scalar_lea.sflag (!%p293_p10), [#allocation3], %s329_s25 }
  0x13   : > { %s599_s16 = scalar_lea.hbm (!%p293_p10), %s1138_s8, %s726_s11  ;;  %s817_s14 = scalar_lea.hbm (!%p293_p10), %s1138_s8, 16 }
  0x16   : > { %s333_s19 = scalar_select %p332_p11, %s867_s30, 1  ;;  %vm349_vm0 = vcmask 261120   ;;  %vm376_vm1 = vcmask 64512   ;;  %v414_v10 = vld [vmem:[%s1132_s2 + $0x18] sm:$0xff]  ;;  %v413_v11 = vld [vmem:[%s1132_s2 + $0x10] sm:$0xff]  ;;  %v412_v12 = vld [vmem:[%s1132_s2 + $0x8] sm:$0xff] }
  0x17   : > { %703 = vmatpush.xpose.msk.msra.mxu2 %vm349_vm0, %v414_v10  ;;  %v411_v16 = vld [vmem:[%s1132_s2] sm:$0xff]  ;;  %v877_v24 = vmov 32.0   ;;  %v510_v25 = vld [vmem:[%s1136_s6 + $0x78] sm:$0xff]  ;;  %v509_v26 = vld [vmem:[%s1136_s6 + $0x70] sm:$0xff] }
  0x18   : > { %s698_s20 = sshll.u32 %s333_s19, 3  ;;  %v785_v19 = vld [vmem:[%s1133_s3] ss:$0 sm:$0xff]  ;;  %708 = vmatpush.xpose.msk.msra.mxu3 %vm349_vm0, %v510_v25  ;;  %v508_v29 = vld [vmem:[%s1136_s6 + $0x68] sm:$0xff]  ;;  %v506_v33 = vld [vmem:[%s1136_s6 + $0x58] sm:$0xff] }
  0x19   : > { %s338_s23 = scalar_lea.vmem %s1142_s0, %s698_s20  ;;  %s342_s26 = scalar_lea.vmem %s1131_s1, %s698_s20  ;;  %v507_v31 = vld [vmem:[%s1136_s6 + $0x60] sm:$0xff]  ;;  %v505_v35 = vld [vmem:[%s1136_s6 + $0x50] sm:$0xff]  ;;  %v504_v37 = vld [vmem:[%s1136_s6 + $0x48] sm:$0xff] }
  0x1a   : > { %v344_v0 = vld [vmem:[%s338_s23] sm:$0xff]  ;;  %v502_v43 = vld [vmem:[%s1136_s6 + $0x38] sm:$0xff]  ;;  %v501_v45 = vld [vmem:[%s1136_s6 + $0x30] sm:$0xff]  ;;  %s603_s23 = sshll.u32 %s599_s16, 4  ;;  %s604_s23 = int_to_ptr.hbm [resolvable:$true] %s603_s23 }
  0x1b   : > { %v986_v1 = vld [vmem:[%s342_s26] sm:$0xff]  ;;  %v348_v2 = vmul.f32 0.17677669, %v344_v0  ;;  %704 = vmatpush.xpose.msk.msra.mxu2 %vm349_vm0, %v413_v11  ;;  %v500_v46 = vld [vmem:[%s1136_s6 + $0x28] sm:$0xff]  ;;  %v498_v48 = vld [vmem:[%s1136_s6 + $0x18] sm:$0xff]  ;;  %s697_s26 = sshll.u32 %s329_s25, 3 }
  0x1c   : > { %700 = vmatpush.xpose.msk.msra.mxu0 %vm349_vm0, %v986_v1  ;;  %406 = vmatpush.msra.mxu1 %v986_v1  ;;  %v503_v40 = vld [vmem:[%s1136_s6 + $0x40] sm:$0xff]  ;;  %v497_v49 = vld [vmem:[%s1136_s6 + $0x10] sm:$0xff]  ;;  %v496_v50 = vld [vmem:[%s1136_s6 + $0x8] sm:$0xff]  ;;  %s331_s21 = scalar_lea.vmem [#allocation2], %s697_s26  ;;  %s811_s0 = sshra.s32 %s604_s23, 4  ;;  %s812_s0 = int_to_ptr.hbm [resolvable:$true] %s811_s0 }
  0x1d   : > { %709 = vmatpush.xpose.msk.msra.mxu3 %vm349_vm0, %v509_v26  ;;  %v499_v47 = vld [vmem:[%s1136_s6 + $0x20] sm:$0xff]  ;;  %s601_s22 = sshll.u32 %s331_s21, 4  ;;  %s813_s30 = scalar_lea.hbm %s812_s0, 8  ;;  %s602_s22 = int_to_ptr.vmem [resolvable:$true] %s601_s22 }
  0x1e   : > { %v495_v51 = vld [vmem:[%s1136_s6] sm:$0xff]  ;;  %p814_p12 = scmp.ne.s32.totalorder %s812_s0, %s813_s30  ;;  %p818_p1 = scmp.lt.s32.totalorder %s812_s0, %s1138_s8 }
  0x1f   : > { %701 = vmatmul.msk.f32.vlgmr.msra.gmra.mxu0 %vm349_vm0, %v348_v2  ;;  %705 = vmatpush.xpose.msk.msra.mxu2 %vm349_vm0, %v412_v12  ;;  %v786_v61 = vld [vmem:[%s1134_s4] ss:$0 sm:$0xff]  ;;  %p819_p2 = scmp.lt.s32.totalorder %s817_s14, %s813_s30 }
  0x20   : > { %v787_v0 = vld [vmem:[%s1135_s5] ss:$0 sm:$0xff]  ;;  %p815_p13 = pnand %p814_p12, %p963_p4 }
  0x21   : > { %710 = vmatpush.xpose.msk.msra.mxu3 %vm349_vm0, %v508_v29  ;;  %p820_p3 = por %p819_p2, %p818_p1 }
  0x22   : > { %p816_p0 = pneg %p815_p13 }
  0x23   : > { %706 = vmatpush.xpose.msk.msra.mxu2 %vm349_vm0, %v411_v16 }
  0x24   : > { %p821_p5 = pnand %p820_p3, %p816_p0 }
  0x25   : > { %711 = vmatpush.xpose.msk.msra.mxu3 %vm349_vm0, %v507_v31 }
  0x29   : > { %712 = vmatpush.xpose.msk.msra.mxu3 %vm349_vm0, %v506_v33 }
  0x2d   : > { %713 = vmatpush.xpose.msk.msra.mxu3 %vm349_vm0, %v505_v35 }
  0x31   : > { %714 = vmatpush.xpose.msk.msra.mxu3 %vm349_vm0, %v504_v37 }
  0x35   : > { %715 = vmatpush.xpose.msk.msra.mxu3 %vm349_vm0, %v503_v40 }
  0x39   : > { %716 = vmatpush.xpose.msk.msra.mxu3 %vm349_vm0, %v502_v43 }
  0x3d   : > { %717 = vmatpush.xpose.msk.msra.mxu3 %vm349_vm0, %v501_v45 }
  0x41   : > { %718 = vmatpush.xpose.msk.msra.mxu3 %vm349_vm0, %v500_v46 }
  0x45   : > { %719 = vmatpush.xpose.msk.msra.mxu3 %vm349_vm0, %v499_v47 }
  0x49   : > { %720 = vmatpush.xpose.msk.msra.mxu3 %vm349_vm0, %v498_v48 }
  0x4d   : > { %721 = vmatpush.xpose.msk.msra.mxu3 %vm349_vm0, %v497_v49 }
  0x51   : > { %722 = vmatpush.xpose.msk.msra.mxu3 %vm349_vm0, %v496_v50 }
  0x55   : > { %723 = vmatpush.xpose.msk.msra.mxu3 %vm349_vm0, %v495_v51 }
  0x9c   : > { %v373_v3 = vpop.f32.mrf.mxu0 }
  0x9d   : > { %v377_v4 = vsel %vm376_vm1, %v373_v3, -inf }
  0x9e   : > { %378 = vmax.xlane.f32.xlu0 %v377_v4 }
 0x111   : > { %v379_v5 = vpop.xlane.xlu0 %378 }
 0x112   : > { %v380_v6 = vsub.f32 %v373_v3, %v379_v5  ;;  %v788_v5 = vld [vmem:[%s1137_s7] ss:$0 sm:$0xff] }
 0x114   : > { %v381_v7 = vmul.f32 1.442695, %v380_v6 }
 0x116   : > { %789 = vpow2.f32 %v381_v7 }
 0x11c   : > { %v790_v8 = vpop.eup %789 }
 0x11d   : > { %v383_v9 = vsel %vm376_vm1, %v790_v8, 0.0 }
 0x11e   : > { %384 = vadd.xlane.f32.xlu0 %v383_v9 }
 0x191   : > { %v385_v13 = vpop.xlane.xlu0 %384 }
 0x192   : > { %791 = vrcp.f32 %v385_v13 }
 0x193   : > { %793 = vrcp.f32 %v877_v24 }
 0x198   : > { %v792_v14 = vpop.eup %791 }
 0x199   : > { %v387_v15 = vmul.f32 %v792_v14, %v790_v8  ;;  %v794_v27 = vpop.eup %793 }
 0x19a   : > { %v459_v28 = vmul.f32 32.0, %v794_v27  ;;  %vm463_vm2 = vweird.f32 %v794_v27 }
 0x19b   : > { %702 = vmatmul.msk.f32.vlgmr.msra.gmra.mxu1 %vm376_vm1, %v387_v15 }
 0x19c   : > { %v460_v30 = vsub.f32 1.0, %v459_v28 }
 0x19e   : > { %v461_v32 = vmul.f32 %v794_v27, %v460_v30 }
 0x1a0   : > { %v462_v34 = vadd.f32 %v794_v27, %v461_v32 }
 0x1a2   : > { %v464_v36 = vsel %vm463_vm2, %v794_v27, %v462_v34 }
 0x218   : > { %v408_v17 = vpop.f32.mrf.mxu1 }
 0x219   : > { %v409_v18 = vadd.f32 %v408_v17, %v986_v1 }
 0x21b   : > { %707 = vmatmul.msk.f32.vlgmr.msra.gmra.mxu2 %vm349_vm0, %v409_v18 }
 0x29e   : > { %v451_v20 = vpop.f32.mrf.mxu2 }
 0x29f   : > { %v452_v21 = vadd.f32 %v785_v19, %v451_v20 }
 0x2a1   : > { %v454_v22 = vmax.f32 %v452_v21, 0.0 }
 0x2a3   : > { %v455_v23 = vsel %vm349_vm0, %v454_v22, 0.0 }
 0x2a4   : > { %456 = vadd.xlane.f32.xlu1 %v455_v23 }
 0x317   : > { %v457_v38 = vpop.xlane.xlu1 %456 }
 0x318   : > { %v465_v39 = vmul.f32 %v464_v36, %v457_v38 }
 0x31a   : > { %v466_v41 = vsub.f32 %v454_v22, %v465_v39 }
 0x31c   : > { %v467_v42 = vmul.f32 %v466_v41, %v466_v41 }
 0x31e   : > { %v468_v44 = vsel %vm349_vm0, %v467_v42, 0.0 }
 0x31f   : > { %469 = vadd.xlane.f32.xlu1 %v468_v44 }
 0x392   : > { %v470_v52 = vpop.xlane.xlu1 %469 }
 0x393   : > { %v471_v53 = vmul.f32 %v470_v52, %v464_v36 }
 0x395   : > { %v472_v54 = vadd.f32 1e-05, %v471_v53 }
 0x397   : > { %795 = vrsqrt.f32 %v472_v54  ;;  %vm479_vm4 = vweird.f32 %v472_v54 }
 0x39d   : > { %v796_v55 = vpop.eup %795 }
 0x39e   : > { %v474_v56 = vmul.f32 %v796_v55, %v472_v54  ;;  %vm480_vm3 = vweird.f32 %v796_v55 }
 0x39f   : > { %vm481_vm5 = vmor %vm479_vm4, %vm480_vm3 }
 0x3a0   : > { %v475_v57 = vmul.f32 %v796_v55, %v474_v56 }
 0x3a2   : > { %v476_v58 = vmul.f32 0.5, %v475_v57 }
 0x3a4   : > { %v477_v59 = vsub.f32 1.5, %v476_v58 }
 0x3a6   : > { %v478_v60 = vmul.f32 %v796_v55, %v477_v59 }
 0x3a8   : > { %v482_v62 = vsel %vm481_vm5, %v796_v55, %v478_v60 }
 0x3a9   : > { %v483_v63 = vmul.f32 %v482_v62, %v466_v41 }
 0x3ab   : > { %v488_v2 = vmul.f32 %v786_v61, %v483_v63 }
 0x3ad   : > { %v493_v3 = vadd.f32 %v787_v0, %v488_v2 }
 0x3af   : > { %v494_v4 = vadd.f32 %v493_v3, %v986_v1 }
 0x3b1   : > { %724 = vmatmul.msk.f32.vlgmr.msra.gmra.mxu3 %vm349_vm0, %v494_v4 }
 0x434   : > { %v583_v6 = vpop.f32.mrf.mxu3 }
 0x435   : > { %v584_v7 = vadd.f32 %v788_v5, %v583_v6 }
 0x437   : > { %586 = vst [vmem:[%s331_s21] sm:$0xff] %v584_v7 }
 0x438   : > { %824 = shalt.err (!%p821_p5)
}
 0x439   : > { %729 = dma.vmem_to_hbm [thread:$0]  (%p963_p4), %s602_s22, 128, %s604_s23, %s588_s24  }
 0x43a PF: > { %p735_p6 = scmp.ge.s32.totalorder %s875_s10, 2  ;;  %s615_s25 = sand.u32 1, %s855_s27  }
 0x43b   : > { %s616_s16 = scalar_lea.sflag [#allocation3], %s615_s25 }
 0x43c   : > { %p732_p7 = pnand %p735_p6, %p970_p8 }
 0x43e   : > { %p733_p9 = pneg %p732_p7 }
 0x440   : > { %850 = dma.done.wait (%p733_p9), %s616_s16, 128  }
 0x441   : > { %852 = vsyncadd (%p733_p9), %s616_s16, 4294967168  ;;  %s21_s10 = sadd.s32 1, %s875_s10   ;;  %s1143_s27 = smov %s859_s28 }
 0x442   : > { %p18_p10 = scmp.ge.s32.totalorder %s21_s10, 4   ;;  %s1144_s28 = smov %s863_s29 }
 0x443   : > { %s1145_s29 = smov %s976_s18  ;;  %s1146_s30 = smov %s871_s9 }
 0x444   : > { %s1147_s9 = smov %s1149_s13  ;;  %20 = sbr.rel (!%p18_p10) target bundleno = 6 (0x6), region = 91 }
 0x449   :  { %622 = vsyncpa [#allocation3], 1 }
 0x44a   :  { %624 = vsyncpa [#allocation3 + $0x1], 1 }

// kernel: tpu_custom_call.1
= control target key start
LH: loop header
LB: loop body
LE: loop exit
PB: predicated region body
PF: predicated region fallthrough
CT: control target
= control target key end

     0   :  { %s1127_s0 = inlined_call_operand.vmem [shape: f32[2,8,32], index: 0, kind: input, shape index: {}]   ;;  %s1128_s1 = inlined_call_operand.vmem [shape: f32[2,8,32], index: 1, kind: input, shape index: {}]   ;;  %s1129_s2 = inlined_call_operand.vmem [shape: f32[32,32], index: 2, kind: input, shape index: {}]   ;;  %s1130_s3 = inlined_call_operand.vmem [shape: f32[1,32], index: 3, kind: input, shape index: {}]   ;;  %s1131_s4 = inlined_call_operand.vmem [shape: f32[1,32], index: 4, kind: input, shape index: {}]   ;;  %s1132_s5 = inlined_call_operand.vmem [shape: f32[1,32], index: 5, kind: input, shape index: {}]   ;;  %s1133_s6 = inlined_call_operand.vmem [shape: f32[128,32], index: 6, kind: input, shape index: {}]   ;;  %s1134_s7 = inlined_call_operand.vmem [shape: f32[1,128], index: 7, kind: input, shape index: {}]   ;;  %s1135_s8 = inlined_call_operand.hbm [shape: f32[2,8,128], index: 8, kind: output, shape index: {}]  }
   0x1   :  { %1136 = sst [smem:[#allocation5_spill]] %s1127_s0 }
   0x2   :  { %13 = vsyncpa [#allocation3], 0 }
   0x3   :  { %15 = vsyncpa [#allocation3 + $0x1], 0  ;;  %s920_s27 = smov 0   ;;  %s922_s28 = smov 0  }
   0x4   :  { %s924_s29 = smov 0   ;;  %s926_s30 = smov 0  }
   0x5   :  { %s928_s9 = smov 0   ;;  %s930_s10 = smov 0  }
   0x6 LB: > { %s689_s11 = sadd.s32 4294967295, %s872_s10   ;;  %s690_s12 = sadd.s32 4294967294, %s872_s10   ;;  %s872_s10 = sphi %s930_s10, %s21_s10   ;;  %s868_s9 = sphi %s928_s9, %s1144_s9   ;;  %s864_s30 = sphi %s926_s30, %s1143_s30   ;;  %s860_s29 = sphi %s924_s29, %s1142_s29   ;;  %s856_s28 = sphi %s922_s28, %s1141_s28   ;;  %s852_s27 = sphi %s920_s27, %s1140_s27  }
   0x7   : > { %s33_s13 = sadd.s32 1, %s868_s9  ;;  %s222_s14 = sadd.s32 1, %s860_s29 }
   0x8   : > { %p35_p0 = scmp.ge.s32.totalorder %s33_s13, 2  ;;  %p232_p1 = scmp.ne.s32.totalorder %s860_s29, %s856_s28 }
   0x9   : > { %p233_p2 = scmp.eq.s32.totalorder %s689_s11, 1  ;;  %p238_p3 = scmp.ne.s32.totalorder %s856_s28, %s852_s27 }
   0xa   : > { %s1146_s13 = smov (%p35_p0, %s33_s13), 0  ;;  %p239_p5 = scmp.eq.s32.totalorder %s690_s12, 1 }
   0xb   : > { %p960_p4 = por %p233_p2, %p232_p1  ;;  %s217_s16 = ssub.s32 %s868_s9, %s1146_s13 }
   0xc   : > { %p693_p6 = scmp.ge.s32.totalorder %s872_s10, 1  ;;  %p220_p7 = scmp.eq.s32.totalorder %s217_s16, 0 }
   0xd   : > { %p967_p8 = por %p239_p5, %p238_p3  ;;  %p292_p9 = scmp.lt.s32.totalorder %s872_s10, 3 }
   0xe   : > { %s973_s18 = scalar_select %p220_p7, %s860_s29, %s222_s14  }
   0xf   : > { %p293_p10 = pnand %p693_p6, %p292_p9 }
  0x10   : > { %p332_p11 = scmp.lt.s32.totalorder (!%p293_p10), %s864_s30, 1  ;;  %s1139_s0 = sld [smem:[#allocation5_spill]] (!%p293_p10) }
  0x11   : > { %296 = sbr.rel (%p293_p10) target bundleno = 1082 (0x43a), region = 52  ;;  %s329_s25 = sand.u32 (!%p293_p10), 1, %s856_s28  }
  0x12   : > { %s723_s11 = sshll.u32 (!%p293_p10), %s864_s30, 3  ;;  %s588_s24 = scalar_lea.sflag (!%p293_p10), [#allocation3], %s329_s25 }
  0x13   : > { %s599_s16 = scalar_lea.hbm (!%p293_p10), %s1135_s8, %s723_s11  ;;  %s814_s14 = scalar_lea.hbm (!%p293_p10), %s1135_s8, 16 }
  0x16   : > { %s333_s19 = scalar_select %p332_p11, %s864_s30, 1  ;;  %vm349_vm0 = vcmask 261120   ;;  %vm376_vm1 = vcmask 64512   ;;  %v414_v10 = vld [vmem:[%s1129_s2 + $0x18] sm:$0xff]  ;;  %v413_v11 = vld [vmem:[%s1129_s2 + $0x10] sm:$0xff]  ;;  %v412_v12 = vld [vmem:[%s1129_s2 + $0x8] sm:$0xff] }
  0x17   : > { %700 = vmatpush.xpose.msk.msra.mxu2 %vm349_vm0, %v414_v10  ;;  %v411_v16 = vld [vmem:[%s1129_s2] sm:$0xff]  ;;  %v874_v24 = vmov 32.0   ;;  %v510_v25 = vld [vmem:[%s1133_s6 + $0x78] sm:$0xff]  ;;  %v509_v26 = vld [vmem:[%s1133_s6 + $0x70] sm:$0xff] }
  0x18   : > { %s695_s20 = sshll.u32 %s333_s19, 3  ;;  %v782_v19 = vld [vmem:[%s1130_s3] ss:$0 sm:$0xff]  ;;  %705 = vmatpush.xpose.msk.msra.mxu3 %vm349_vm0, %v510_v25  ;;  %v508_v29 = vld [vmem:[%s1133_s6 + $0x68] sm:$0xff]  ;;  %v506_v33 = vld [vmem:[%s1133_s6 + $0x58] sm:$0xff] }
  0x19   : > { %s338_s23 = scalar_lea.vmem %s1139_s0, %s695_s20  ;;  %s342_s26 = scalar_lea.vmem %s1128_s1, %s695_s20  ;;  %v507_v31 = vld [vmem:[%s1133_s6 + $0x60] sm:$0xff]  ;;  %v505_v35 = vld [vmem:[%s1133_s6 + $0x50] sm:$0xff]  ;;  %v504_v37 = vld [vmem:[%s1133_s6 + $0x48] sm:$0xff] }
  0x1a   : > { %v344_v0 = vld [vmem:[%s338_s23] sm:$0xff]  ;;  %v502_v43 = vld [vmem:[%s1133_s6 + $0x38] sm:$0xff]  ;;  %v501_v45 = vld [vmem:[%s1133_s6 + $0x30] sm:$0xff]  ;;  %s603_s23 = sshll.u32 %s599_s16, 4  ;;  %s604_s23 = int_to_ptr.hbm [resolvable:$true] %s603_s23 }
  0x1b   : > { %v983_v1 = vld [vmem:[%s342_s26] sm:$0xff]  ;;  %v348_v2 = vmul.f32 0.17677669, %v344_v0  ;;  %701 = vmatpush.xpose.msk.msra.mxu2 %vm349_vm0, %v413_v11  ;;  %v500_v46 = vld [vmem:[%s1133_s6 + $0x28] sm:$0xff]  ;;  %v498_v48 = vld [vmem:[%s1133_s6 + $0x18] sm:$0xff]  ;;  %s694_s26 = sshll.u32 %s329_s25, 3 }
  0x1c   : > { %697 = vmatpush.xpose.msk.msra.mxu0 %vm349_vm0, %v983_v1  ;;  %406 = vmatpush.msra.mxu1 %v983_v1  ;;  %v503_v40 = vld [vmem:[%s1133_s6 + $0x40] sm:$0xff]  ;;  %v497_v49 = vld [vmem:[%s1133_s6 + $0x10] sm:$0xff]  ;;  %v496_v50 = vld [vmem:[%s1133_s6 + $0x8] sm:$0xff]  ;;  %s331_s21 = scalar_lea.vmem [#allocation2], %s694_s26  ;;  %s808_s0 = sshra.s32 %s604_s23, 4  ;;  %s809_s0 = int_to_ptr.hbm [resolvable:$true] %s808_s0 }
  0x1d   : > { %706 = vmatpush.xpose.msk.msra.mxu3 %vm349_vm0, %v509_v26  ;;  %v499_v47 = vld [vmem:[%s1133_s6 + $0x20] sm:$0xff]  ;;  %s601_s22 = sshll.u32 %s331_s21, 4  ;;  %s810_s30 = scalar_lea.hbm %s809_s0, 8  ;;  %s602_s22 = int_to_ptr.vmem [resolvable:$true] %s601_s22 }
  0x1e   : > { %v495_v51 = vld [vmem:[%s1133_s6] sm:$0xff]  ;;  %p811_p12 = scmp.ne.s32.totalorder %s809_s0, %s810_s30  ;;  %p815_p1 = scmp.lt.s32.totalorder %s809_s0, %s1135_s8 }
  0x1f   : > { %698 = vmatmul.msk.f32.vlgmr.msra.gmra.mxu0 %vm349_vm0, %v348_v2  ;;  %702 = vmatpush.xpose.msk.msra.mxu2 %vm349_vm0, %v412_v12  ;;  %v783_v61 = vld [vmem:[%s1131_s4] ss:$0 sm:$0xff]  ;;  %p816_p2 = scmp.lt.s32.totalorder %s814_s14, %s810_s30 }
  0x20   : > { %v784_v0 = vld [vmem:[%s1132_s5] ss:$0 sm:$0xff]  ;;  %p812_p13 = pnand %p811_p12, %p960_p4 }
  0x21   : > { %707 = vmatpush.xpose.msk.msra.mxu3 %vm349_vm0, %v508_v29  ;;  %p817_p3 = por %p816_p2, %p815_p1 }
  0x22   : > { %p813_p0 = pneg %p812_p13 }
  0x23   : > { %703 = vmatpush.xpose.msk.msra.mxu2 %vm349_vm0, %v411_v16 }
  0x24   : > { %p818_p5 = pnand %p817_p3, %p813_p0 }
  0x25   : > { %708 = vmatpush.xpose.msk.msra.mxu3 %vm349_vm0, %v507_v31 }
  0x29   : > { %709 = vmatpush.xpose.msk.msra.mxu3 %vm349_vm0, %v506_v33 }
  0x2d   : > { %710 = vmatpush.xpose.msk.msra.mxu3 %vm349_vm0, %v505_v35 }
  0x31   : > { %711 = vmatpush.xpose.msk.msra.mxu3 %vm349_vm0, %v504_v37 }
  0x35   : > { %712 = vmatpush.xpose.msk.msra.mxu3 %vm349_vm0, %v503_v40 }
  0x39   : > { %713 = vmatpush.xpose.msk.msra.mxu3 %vm349_vm0, %v502_v43 }
  0x3d   : > { %714 = vmatpush.xpose.msk.msra.mxu3 %vm349_vm0, %v501_v45 }
  0x41   : > { %715 = vmatpush.xpose.msk.msra.mxu3 %vm349_vm0, %v500_v46 }
  0x45   : > { %716 = vmatpush.xpose.msk.msra.mxu3 %vm349_vm0, %v499_v47 }
  0x49   : > { %717 = vmatpush.xpose.msk.msra.mxu3 %vm349_vm0, %v498_v48 }
  0x4d   : > { %718 = vmatpush.xpose.msk.msra.mxu3 %vm349_vm0, %v497_v49 }
  0x51   : > { %719 = vmatpush.xpose.msk.msra.mxu3 %vm349_vm0, %v496_v50 }
  0x55   : > { %720 = vmatpush.xpose.msk.msra.mxu3 %vm349_vm0, %v495_v51 }
  0x9c   : > { %v373_v3 = vpop.f32.mrf.mxu0 }
  0x9d   : > { %v377_v4 = vsel %vm376_vm1, %v373_v3, -inf }
  0x9e   : > { %378 = vmax.xlane.f32.xlu0 %v377_v4 }
 0x111   : > { %v379_v5 = vpop.xlane.xlu0 %378 }
 0x112   : > { %v380_v6 = vsub.f32 %v373_v3, %v379_v5  ;;  %v785_v5 = vld [vmem:[%s1134_s7] ss:$0 sm:$0xff] }
 0x114   : > { %v381_v7 = vmul.f32 1.442695, %v380_v6 }
 0x116   : > { %786 = vpow2.f32 %v381_v7 }
 0x11c   : > { %v787_v8 = vpop.eup %786 }
 0x11d   : > { %v383_v9 = vsel %vm376_vm1, %v787_v8, 0.0 }
 0x11e   : > { %384 = vadd.xlane.f32.xlu0 %v383_v9 }
 0x191   : > { %v385_v13 = vpop.xlane.xlu0 %384 }
 0x192   : > { %788 = vrcp.f32 %v385_v13 }
 0x193   : > { %790 = vrcp.f32 %v874_v24 }
 0x198   : > { %v789_v14 = vpop.eup %788 }
 0x199   : > { %v387_v15 = vmul.f32 %v789_v14, %v787_v8  ;;  %v791_v27 = vpop.eup %790 }
 0x19a   : > { %v459_v28 = vmul.f32 32.0, %v791_v27  ;;  %vm463_vm2 = vweird.f32 %v791_v27 }
 0x19b   : > { %699 = vmatmul.msk.f32.vlgmr.msra.gmra.mxu1 %vm376_vm1, %v387_v15 }
 0x19c   : > { %v460_v30 = vsub.f32 1.0, %v459_v28 }
 0x19e   : > { %v461_v32 = vmul.f32 %v791_v27, %v460_v30 }
 0x1a0   : > { %v462_v34 = vadd.f32 %v791_v27, %v461_v32 }
 0x1a2   : > { %v464_v36 = vsel %vm463_vm2, %v791_v27, %v462_v34 }
 0x218   : > { %v408_v17 = vpop.f32.mrf.mxu1 }
 0x219   : > { %v409_v18 = vadd.f32 %v408_v17, %v983_v1 }
 0x21b   : > { %704 = vmatmul.msk.f32.vlgmr.msra.gmra.mxu2 %vm349_vm0, %v409_v18 }
 0x29e   : > { %v451_v20 = vpop.f32.mrf.mxu2 }
 0x29f   : > { %v452_v21 = vadd.f32 %v782_v19, %v451_v20 }
 0x2a1   : > { %v454_v22 = vmax.f32 %v452_v21, 0.0 }
 0x2a3   : > { %v455_v23 = vsel %vm349_vm0, %v454_v22, 0.0 }
 0x2a4   : > { %456 = vadd.xlane.f32.xlu1 %v455_v23 }
 0x317   : > { %v457_v38 = vpop.xlane.xlu1 %456 }
 0x318   : > { %v465_v39 = vmul.f32 %v464_v36, %v457_v38 }
 0x31a   : > { %v466_v41 = vsub.f32 %v454_v22, %v465_v39 }
 0x31c   : > { %v467_v42 = vmul.f32 %v466_v41, %v466_v41 }
 0x31e   : > { %v468_v44 = vsel %vm349_vm0, %v467_v42, 0.0 }
 0x31f   : > { %469 = vadd.xlane.f32.xlu1 %v468_v44 }
 0x392   : > { %v470_v52 = vpop.xlane.xlu1 %469 }
 0x393   : > { %v471_v53 = vmul.f32 %v470_v52, %v464_v36 }
 0x395   : > { %v472_v54 = vadd.f32 1e-05, %v471_v53 }
 0x397   : > { %792 = vrsqrt.f32 %v472_v54  ;;  %vm479_vm4 = vweird.f32 %v472_v54 }
 0x39d   : > { %v793_v55 = vpop.eup %792 }
 0x39e   : > { %v474_v56 = vmul.f32 %v793_v55, %v472_v54  ;;  %vm480_vm3 = vweird.f32 %v793_v55 }
 0x39f   : > { %vm481_vm5 = vmor %vm479_vm4, %vm480_vm3 }
 0x3a0   : > { %v475_v57 = vmul.f32 %v793_v55, %v474_v56 }
 0x3a2   : > { %v476_v58 = vmul.f32 0.5, %v475_v57 }
 0x3a4   : > { %v477_v59 = vsub.f32 1.5, %v476_v58 }
 0x3a6   : > { %v478_v60 = vmul.f32 %v793_v55, %v477_v59 }
 0x3a8   : > { %v482_v62 = vsel %vm481_vm5, %v793_v55, %v478_v60 }
 0x3a9   : > { %v483_v63 = vmul.f32 %v482_v62, %v466_v41 }
 0x3ab   : > { %v488_v2 = vmul.f32 %v783_v61, %v483_v63 }
 0x3ad   : > { %v493_v3 = vadd.f32 %v784_v0, %v488_v2 }
 0x3af   : > { %v494_v4 = vadd.f32 %v493_v3, %v983_v1 }
 0x3b1   : > { %721 = vmatmul.msk.f32.vlgmr.msra.gmra.mxu3 %vm349_vm0, %v494_v4 }
 0x434   : > { %v583_v6 = vpop.f32.mrf.mxu3 }
 0x435   : > { %v584_v7 = vadd.f32 %v785_v5, %v583_v6 }
 0x437   : > { %586 = vst [vmem:[%s331_s21] sm:$0xff] %v584_v7 }
 0x438   : > { %821 = shalt.err (!%p818_p5)
}
 0x439   : > { %726 = dma.vmem_to_hbm [thread:$0]  (%p960_p4), %s602_s22, 128, %s604_s23, %s588_s24  }
 0x43a PF: > { %p732_p6 = scmp.ge.s32.totalorder %s872_s10, 2  ;;  %s615_s25 = sand.u32 1, %s852_s27  }
 0x43b   : > { %s616_s16 = scalar_lea.sflag [#allocation3], %s615_s25 }
 0x43c   : > { %p729_p7 = pnand %p732_p6, %p967_p8 }
 0x43e   : > { %p730_p9 = pneg %p729_p7 }
 0x440   : > { %847 = dma.done.wait (%p730_p9), %s616_s16, 128  }
 0x441   : > { %849 = vsyncadd (%p730_p9), %s616_s16, 4294967168  ;;  %s21_s10 = sadd.s32 1, %s872_s10   ;;  %s1140_s27 = smov %s856_s28 }
 0x442   : > { %p18_p10 = scmp.ge.s32.totalorder %s21_s10, 4   ;;  %s1141_s28 = smov %s860_s29 }
 0x443   : > { %s1142_s29 = smov %s973_s18  ;;  %s1143_s30 = smov %s868_s9 }
 0x444   : > { %s1144_s9 = smov %s1146_s13  ;;  %20 = sbr.rel (!%p18_p10) target bundleno = 6 (0x6), region = 91 }
 0x449   :  { %622 = vsyncpa [#allocation3], 1 }
 0x44a   :  { %624 = vsyncpa [#allocation3 + $0x1], 1 }

</bundles_post_ra>
